<compile_context>
chip_gen: v7x
topology: tpu7x:2x2x1
jax: 0.10.0
libtpu: 0.0.40
codegen_flags: <defaults>
</compile_context>

<pallas_src>
import functools

import jax
import jax.numpy as jnp
from jax import lax
from jax.experimental import pallas as pl
from jax.experimental.pallas import tpu as pltpu


def _ceil_div(a, b):
    return -(-a // b)


def _round_up(x, m):
    return _ceil_div(x, m) * m


_LANE = 128
_INNER_COLS = 512                      # columns folded per fori_loop iteration
_TARGET_STEP_BYTES = 8 * 1024 * 1024   # input bytes (both operands) per grid step


def _chunk_update(carry, pred_ref, true_ref, lo, slot, valid_cols=None):
    """Stream one 128-lane chunk from the refs into the interleaved partial sums."""
    ci0, ci1, cd0, cd1 = carry
    p = pred_ref[:, pl.ds(lo, _LANE)].astype(jnp.float32)
    t = true_ref[:, pl.ds(lo, _LANE)].astype(jnp.float32)
    inter = p * t
    denom = p + t
    if valid_cols is not None:                     # ragged tail of the last tile
        col = lax.broadcasted_iota(jnp.int32, inter.shape, 1)
        keep = col < valid_cols
        inter = jnp.where(keep, inter, 0.0)
        denom = jnp.where(keep, denom, 0.0)
    if slot == 0:
        return ci0 + inter, ci1, cd0 + denom, cd1
    return ci0, ci1 + inter, cd0, cd1 + denom


def _fold_cols(pred_ref, true_ref, col_end):
    """Lane-folded f32 sums of pred*true and pred+true over tile columns [0, col_end)."""
    rows = pred_ref.shape[0]
    zero = jnp.zeros((rows, _LANE), jnp.float32)
    carry = (zero, zero, zero, zero)               # 2-way interleave per quantity (ILP)

    chunks_per_group = _INNER_COLS // _LANE
    n_groups = col_end // _INNER_COLS

    if n_groups > 0:                               # bulk: dynamic loop, aligned slices
        def body(g, c):
            base = pl.multiple_of(g * _INNER_COLS, _INNER_COLS)
            for j in range(chunks_per_group):
                lo = pl.multiple_of(base + j * _LANE, _LANE)
                c = _chunk_update(c, pred_ref, true_ref, lo, j & 1)
            return c
        carry = lax.fori_loop(0, n_groups, body, carry)

    # Static tail: remaining full 128-lane chunks, then one masked partial chunk.
    tail_start = n_groups * _INNER_COLS
    n_full = (col_end - tail_start) // _LANE
    for j in range(n_full):
        carry = _chunk_update(carry, pred_ref, true_ref, tail_start + j * _LANE, j & 1)
    partial = col_end - tail_start - n_full * _LANE
    if partial > 0:
        carry = _chunk_update(carry, pred_ref, true_ref,
                              tail_start + n_full * _LANE, n_full & 1,
                              valid_cols=partial)

    ci0, ci1, cd0, cd1 = carry
    return ci0 + ci1, cd0 + cd1


def _dice_kernel(pred_ref, true_ref, inter_ref, denom_ref, inter_acc, denom_acc,
                 *, n_split, k_steps, tk, last_cols):
    """Grid = (n_split ["parallel" HW super-chunks], k_steps [reduction tiles]).

    pred_ref/true_ref : (NC, TK)  VMEM tiles (native input dtype)
    inter_ref/denom_ref : (NC, 1) per-parallel-slice row sums (f32)
    inter_acc/denom_acc : (NC, 128) f32 lane accumulators (VMEM scratch)
    """
    k = pl.program_id(1)

    @pl.when(k == 0)
    def _init():
        inter_acc[...] = jnp.zeros_like(inter_acc)
        denom_acc[...] = jnp.zeros_like(denom_acc)

    def accumulate(col_end):
        ci, cd = _fold_cols(pred_ref, true_ref, col_end)
        inter_acc[...] += ci
        denom_acc[...] += cd

    if last_cols == tk:
        accumulate(tk)                         # every tile is column-full
    elif n_split * k_steps == 1:
        accumulate(last_cols)                  # single (ragged) tile
    else:
        i = pl.program_id(0)
        is_last = jnp.logical_and(i == n_split - 1, k == k_steps - 1)

        @pl.when(jnp.logical_not(is_last))
        def _full_tile():
            accumulate(tk)

        @pl.when(is_last)
        def _ragged_tile():
            accumulate(last_cols)

    @pl.when(k == k_steps - 1)
    def _epilogue():
        inter_ref[...] = jnp.sum(inter_acc[...], axis=-1, keepdims=True)
        denom_ref[...] = jnp.sum(denom_acc[...], axis=-1, keepdims=True)


def _vmem_budgets():
    """Generation-aware (input-stream budget, vmem_limit ceiling) in bytes."""
    try:
        phys = int(pltpu.get_tpu_info().vmem_capacity_bytes)
    except Exception:
        phys = 64 * 1024 * 1024                       # conservative (v7x-sized) fallback
    if phys >= 100 * 1024 * 1024:                     # v5e / v6e: 128 MiB physical VMEM
        return 88 * 1024 * 1024, 104 * 1024 * 1024
    return 38 * 1024 * 1024, 56 * 1024 * 1024         # v7x: 64 MiB physical VMEM


def dice_loss(y_pred, y_true, smooth=1.0):
    """Pallas implementation of DiceLoss.forward (returns a scalar loss)."""
    assert y_pred.shape == y_true.shape and y_pred.ndim == 4
    n, c, h, w = y_pred.shape
    nc = n * c
    hw = h * w

    # Contiguous reshape only: no dtype cast, no pad, no extra HBM pass.
    pred2 = y_pred.reshape(nc, hw)
    true2 = y_true.reshape(nc, hw)
    itemsize = jnp.dtype(pred2.dtype).itemsize

    input_budget, vmem_ceiling = _vmem_budgets()

    # --- Tile sizing: large 128-multiple HW tiles sized by bytes per grid step ---
    per_col_bytes = 2 * nc * itemsize                 # both inputs, one column
    want_tk = _round_up(_ceil_div(_TARGET_STEP_BYTES, per_col_bytes), _LANE)
    max_tk = max(_LANE, (input_budget // (2 * per_col_bytes)) // _LANE * _LANE)
    hw128 = _round_up(hw, _LANE)
    tk = max(_LANE, min(want_tk, max_tk, hw128))

    total_k = _ceil_div(hw, tk)
    if total_k >= 4:
        total_k = _round_up(total_k, 2)               # even tile count -> 2-way split
    tk = _round_up(_ceil_div(hw, total_k), _LANE)     # rebalance to near-equal tiles
    total_k = _ceil_div(hw, tk)

    n_split = 2 if (total_k >= 4 and total_k % 2 == 0) else 1
    k_steps = total_k // n_split
    last_cols = hw - (total_k - 1) * tk               # valid columns in the last tile

    input_vmem = 2 * 2 * nc * tk * itemsize           # 2 inputs x 2 pipeline buffers
    scratch_bytes = 2 * _round_up(nc, 8) * _LANE * 4
    vmem_limit = int(min(vmem_ceiling,
                         max(32 * 1024 * 1024,
                             input_vmem + scratch_bytes + 4 * 1024 * 1024)))

    kernel = functools.partial(_dice_kernel, n_split=n_split, k_steps=k_steps,
                               tk=tk, last_cols=last_cols)

    col_map = lambda i, k: (0, i * k_steps + k)
    out_map = lambda i, k: (i, 0, 0)

    inter, denom = pl.pallas_call(
        kernel,
        out_shape=(jax.ShapeDtypeStruct((n_split, nc, 1), jnp.float32),
                   jax.ShapeDtypeStruct((n_split, nc, 1), jnp.float32)),
        grid_spec=pltpu.PrefetchScalarGridSpec(
            num_scalar_prefetch=0,
            grid=(n_split, k_steps),
            in_specs=[
                pl.BlockSpec((nc, tk), col_map),
                pl.BlockSpec((nc, tk), col_map),
            ],
            out_specs=(
                pl.BlockSpec((None, nc, 1), out_map),
                pl.BlockSpec((None, nc, 1), out_map),
            ),
            scratch_shapes=[
                pltpu.VMEM((nc, _LANE), jnp.float32),
                pltpu.VMEM((nc, _LANE), jnp.float32),
            ],
        ),
        compiler_params=pltpu.CompilerParams(
            dimension_semantics=("parallel", "arbitrary"),
            vmem_limit_bytes=vmem_limit,
        ),
    )(pred2, true2)

    # Tiny XLA epilogue: combine per-split partials, dice formula, mean.
    # (Doing `smooth` here avoids recompiles when smooth varies at runtime.)
    inter = jnp.sum(inter, axis=(0, 2))               # (NC,)
    denom = jnp.sum(denom, axis=(0, 2))               # (NC,)
    smooth = jnp.asarray(smooth, jnp.float32)
    dice = (2.0 * inter + smooth) / (denom + smooth)
    return 1.0 - jnp.mean(dice)


def dice_loss_ref(y_pred, y_true, smooth=1.0):
    """Pure-JAX reference matching the PyTorch module exactly."""
    y_pred = y_pred.astype(jnp.float32)
    y_true = y_true.astype(jnp.float32)
    intersection = (y_pred * y_true).sum(axis=2).sum(axis=2)
    dice = (2.0 * intersection + smooth) / (
        y_pred.sum(axis=2).sum(axis=2) + y_true.sum(axis=2).sum(axis=2) + smooth)
    return 1.0 - dice.mean()


if __name__ == "__main__":
    key = jax.random.PRNGKey(0)
    k1, k2 = jax.random.split(key)

    N, C, H, W = 2, 4, 16, 16
    # Predictions in [0, 1] (e.g. post-sigmoid), binary targets.
    y_pred = jax.nn.sigmoid(jax.random.normal(k1, (N, C, H, W), jnp.float32))
    y_true = (jax.random.uniform(k2, (N, C, H, W)) > 0.5).astype(jnp.float32)

    loss = jax.block_until_ready(dice_loss(y_pred, y_true, smooth=1.0))
    ref = jax.block_until_ready(dice_loss_ref(y_pred, y_true, smooth=1.0))

    assert jnp.allclose(loss, ref, atol=1e-5, rtol=1e-5), (loss, ref)
    print("KERNEL_OK")
</pallas_src>

<mosaic_0001>
module attributes {stable_mosaic.version = 11 : i64} {
  func.func @_dice_kernel(%arg0: i32, %arg1: i32, %arg2: memref<8x256xf32, #tpu.memory_space<vmem>>, %arg3: memref<8x256xf32, #tpu.memory_space<vmem>>, %arg4: memref<1x8x1xf32, #tpu.memory_space<vmem>>, %arg5: memref<1x8x1xf32, #tpu.memory_space<vmem>>, %arg6: memref<8x128xf32, #tpu.memory_space<vmem>>, %arg7: memref<8x128xf32, #tpu.memory_space<vmem>>) attributes {dimension_semantics = [#tpu.dimension_semantics<parallel>, #tpu.dimension_semantics<arbitrary>], iteration_bounds = array<i64: 1, 1>, scalar_prefetch = 0 : i64, scratch_operands = 2 : i64, tpu.core_type = #tpu.core_type<tc>, window_params = [{transform_indices = @transform_0, window_bounds = array<i64: 8, 256>}, {transform_indices = @transform_1, window_bounds = array<i64: 8, 256>}, {transform_indices = @transform_2, window_bounds = array<i64: 1, 8, 1>}, {transform_indices = @transform_3, window_bounds = array<i64: 1, 8, 1>}]} {
    %c0_i32 = arith.constant 0 : i32
    %0 = arith.cmpi eq, %arg1, %c0_i32 : i32
    %1 = arith.extui %0 : i1 to i32
    %c0_i32_0 = arith.constant 0 : i32
    %2 = arith.cmpi ne, %1, %c0_i32_0 : i32
    scf.if %2 {
      %cst_17 = arith.constant 0.000000e+00 : f32
      %27 = vector.broadcast %cst_17 : f32 to vector<8x128xf32>
      %c0_18 = arith.constant 0 : index
      %c0_19 = arith.constant 0 : index
      %28 = vector.load %arg6[%c0_18, %c0_19] : memref<8x128xf32, #tpu.memory_space<vmem>>, vector<8x128xf32>
      tpu.vector_store %arg6[%c0_18, %c0_19], %27 {strides = array<i32>} : memref<8x128xf32, #tpu.memory_space<vmem>>, vector<8x128xf32>,
      %cst_20 = arith.constant 0.000000e+00 : f32
      %29 = vector.broadcast %cst_20 : f32 to vector<8x128xf32>
      %c0_21 = arith.constant 0 : index
      %c0_22 = arith.constant 0 : index
      %30 = vector.load %arg7[%c0_21, %c0_22] : memref<8x128xf32, #tpu.memory_space<vmem>>, vector<8x128xf32>
      tpu.vector_store %arg7[%c0_21, %c0_22], %29 {strides = array<i32>} : memref<8x128xf32, #tpu.memory_space<vmem>>, vector<8x128xf32>,
    } else {
    }
    %cst = arith.constant 0.000000e+00 : f32
    %3 = vector.broadcast %cst : f32 to vector<8x128xf32>
    %c0 = arith.constant 0 : index
    %c0_1 = arith.constant 0 : index
    %4 = vector.load %arg2[%c0, %c0_1] : memref<8x256xf32, #tpu.memory_space<vmem>>, vector<8x128xf32>
    %c0_2 = arith.constant 0 : index
    %c0_3 = arith.constant 0 : index
    %5 = vector.load %arg3[%c0_2, %c0_3] : memref<8x256xf32, #tpu.memory_space<vmem>>, vector<8x128xf32>
    %6 = arith.mulf %4, %5 : vector<8x128xf32>
    %7 = arith.addf %4, %5 : vector<8x128xf32>
    %8 = arith.addf %3, %6 : vector<8x128xf32>
    %9 = arith.addf %3, %7 : vector<8x128xf32>
    %c0_4 = arith.constant 0 : index
    %c128 = arith.constant 128 : index
    %10 = vector.load %arg2[%c0_4, %c128] : memref<8x256xf32, #tpu.memory_space<vmem>>, vector<8x128xf32>
    %c0_5 = arith.constant 0 : index
    %c128_6 = arith.constant 128 : index
    %11 = vector.load %arg3[%c0_5, %c128_6] : memref<8x256xf32, #tpu.memory_space<vmem>>, vector<8x128xf32>
    %12 = arith.mulf %10, %11 : vector<8x128xf32>
    %13 = arith.addf %10, %11 : vector<8x128xf32>
    %14 = arith.addf %3, %12 : vector<8x128xf32>
    %15 = arith.addf %3, %13 : vector<8x128xf32>
    %16 = arith.addf %8, %14 : vector<8x128xf32>
    %17 = arith.addf %9, %15 : vector<8x128xf32>
    %c0_7 = arith.constant 0 : index
    %c0_8 = arith.constant 0 : index
    %18 = vector.load %arg6[%c0_7, %c0_8] : memref<8x128xf32, #tpu.memory_space<vmem>>, vector<8x128xf32>
    %19 = arith.addf %18, %16 : vector<8x128xf32>
    %c0_9 = arith.constant 0 : index
    %c0_10 = arith.constant 0 : index
    %20 = vector.load %arg6[%c0_9, %c0_10] : memref<8x128xf32, #tpu.memory_space<vmem>>, vector<8x128xf32>
    tpu.vector_store %arg6[%c0_9, %c0_10], %19 {strides = array<i32>} : memref<8x128xf32, #tpu.memory_space<vmem>>, vector<8x128xf32>,
    %c0_11 = arith.constant 0 : index
    %c0_12 = arith.constant 0 : index
    %21 = vector.load %arg7[%c0_11, %c0_12] : memref<8x128xf32, #tpu.memory_space<vmem>>, vector<8x128xf32>
    %22 = arith.addf %21, %17 : vector<8x128xf32>
    %c0_13 = arith.constant 0 : index
    %c0_14 = arith.constant 0 : index
    %23 = vector.load %arg7[%c0_13, %c0_14] : memref<8x128xf32, #tpu.memory_space<vmem>>, vector<8x128xf32>
    tpu.vector_store %arg7[%c0_13, %c0_14], %22 {strides = array<i32>} : memref<8x128xf32, #tpu.memory_space<vmem>>, vector<8x128xf32>,
    %c0_i32_15 = arith.constant 0 : i32
    %24 = arith.cmpi eq, %arg1, %c0_i32_15 : i32
    %25 = arith.extui %24 : i1 to i32
    %c0_i32_16 = arith.constant 0 : i32
    %26 = arith.cmpi ne, %25, %c0_i32_16 : i32
    scf.if %26 {
      %c0_17 = arith.constant 0 : index
      %c0_18 = arith.constant 0 : index
      %27 = vector.load %arg6[%c0_17, %c0_18] : memref<8x128xf32, #tpu.memory_space<vmem>>, vector<8x128xf32>
      %cst_19 = arith.constant dense<0.000000e+00> : vector<8xf32>
      %28 = vector.multi_reduction <add>, %27, %cst_19 [1] : vector<8x128xf32> to vector<8xf32>
      %29 = vector.shape_cast %28 : vector<8xf32> to vector<8x1xf32>
      %c0_20 = arith.constant 0 : index
      %c0_21 = arith.constant 0 : index
      %c0_22 = arith.constant 0 : index
      %30 = vector.load %arg4[%c0_20, %c0_21, %c0_22] : memref<1x8x1xf32, #tpu.memory_space<vmem>>, vector<1x8x1xf32>
      %31 = vector.shape_cast %30 : vector<1x8x1xf32> to vector<8x1xf32>
      %32 = vector.shape_cast %29 : vector<8x1xf32> to vector<1x8x1xf32>
      tpu.vector_store %arg4[%c0_20, %c0_21, %c0_22], %32 {strides = array<i32>} : memref<1x8x1xf32, #tpu.memory_space<vmem>>, vector<1x8x1xf32>,
      %c0_23 = arith.constant 0 : index
      %c0_24 = arith.constant 0 : index
      %33 = vector.load %arg7[%c0_23, %c0_24] : memref<8x128xf32, #tpu.memory_space<vmem>>, vector<8x128xf32>
      %cst_25 = arith.constant dense<0.000000e+00> : vector<8xf32>
      %34 = vector.multi_reduction <add>, %33, %cst_25 [1] : vector<8x128xf32> to vector<8xf32>
      %35 = vector.shape_cast %34 : vector<8xf32> to vector<8x1xf32>
      %c0_26 = arith.constant 0 : index
      %c0_27 = arith.constant 0 : index
      %c0_28 = arith.constant 0 : index
      %36 = vector.load %arg5[%c0_26, %c0_27, %c0_28] : memref<1x8x1xf32, #tpu.memory_space<vmem>>, vector<1x8x1xf32>
      %37 = vector.shape_cast %36 : vector<1x8x1xf32> to vector<8x1xf32>
      %38 = vector.shape_cast %35 : vector<8x1xf32> to vector<1x8x1xf32>
      tpu.vector_store %arg5[%c0_26, %c0_27, %c0_28], %38 {strides = array<i32>} : memref<1x8x1xf32, #tpu.memory_space<vmem>>, vector<1x8x1xf32>,
    } else {
    }
    return
  }
  func.func @transform_0(%arg0: i32, %arg1: i32) -> (i32, i32) {
    %c1_i32 = arith.constant 1 : i32
    %0 = arith.muli %arg0, %c1_i32 : i32
    %1 = arith.addi %0, %arg1 : i32
    %c0_i32 = arith.constant 0 : i32
    %c0_i32_0 = arith.constant 0 : i32
    return %c0_i32, %1 : i32, i32
  }
  func.func @transform_1(%arg0: i32, %arg1: i32) -> (i32, i32) {
    %c1_i32 = arith.constant 1 : i32
    %0 = arith.muli %arg0, %c1_i32 : i32
    %1 = arith.addi %0, %arg1 : i32
    %c0_i32 = arith.constant 0 : i32
    %c0_i32_0 = arith.constant 0 : i32
    return %c0_i32, %1 : i32, i32
  }
  func.func @transform_2(%arg0: i32, %arg1: i32) -> (i32, i32, i32) {
    %c0_i32 = arith.constant 0 : i32
    %c0_i32_0 = arith.constant 0 : i32
    %c0_i32_1 = arith.constant 0 : i32
    return %arg0, %c0_i32, %c0_i32_0 : i32, i32, i32
  }
  func.func @transform_3(%arg0: i32, %arg1: i32) -> (i32, i32, i32) {
    %c0_i32 = arith.constant 0 : i32
    %c0_i32_0 = arith.constant 0 : i32
    %c0_i32_1 = arith.constant 0 : i32
    return %arg0, %c0_i32, %c0_i32_0 : i32, i32, i32
  }
}

</mosaic_0001>

<bundles_post_ra>
// kernel: tpu_custom_call.1
= control target key start
LH: loop header
LB: loop body
LE: loop exit
PB: predicated region body
PF: predicated region fallthrough
CT: control target
= control target key end

     0   :  { %9 = vsyncpa [#allocation5], 0  ;;  %s199_s0 = inlined_call_operand.hbm [shape: f32[8,256], index: 0, kind: input, shape index: {}]   ;;  %s200_s1 = inlined_call_operand.hbm [shape: f32[8,256], index: 1, kind: input, shape index: {}]   ;;  %s201_s2 = inlined_call_operand.vmem [shape: f32[1,8,1], index: 2, kind: output, shape index: {0}]   ;;  %s202_s3 = inlined_call_operand.vmem [shape: f32[1,8,1], index: 3, kind: output, shape index: {1}]  }
   0x1   :  { %10 = vsyncpa [#allocation7], 0  ;;  %s147_s12 = smov [#allocation4]   ;;  %s148_s14 = smov [#allocation6]  }
   0x2   :  { %s21_s13 = sshll.u32 %s147_s12, 4  ;;  %s35_s15 = sshll.u32 %s148_s14, 4  ;;  %s22_s13 = int_to_ptr.vmem [resolvable:$true] %s21_s13  ;;  %s36_s15 = int_to_ptr.vmem [resolvable:$true] %s35_s15 }
   0x3   :  { %s99_s18 = scalar_lea.hbm %s199_s0, 256 }
   0x4   :  { %p100_p0 = scmp.ne.s32.totalorder %s199_s0, %s99_s18  ;;  %p103_p1 = scmp.lt.u32.totalorder %s99_s18, %s199_s0 }
   0x6   :  { %p105_p2 = pnand %p103_p1, %p100_p0 }
   0x8   :  { %108 = shalt.err (!%p105_p2)
}
   0x9   :  { %s109_s23 = scalar_lea.vmem %s22_s13, 256  ;;  %p114_p4 = scmp.lt.s32.totalorder %s22_s13, %s22_s13 }
   0xa   :  { %p110_p3 = scmp.ne.s32.totalorder %s22_s13, %s109_s23  ;;  %p115_p5 = scmp.lt.s32.totalorder %s109_s23, %s109_s23 }
   0xc   :  { %p116_p6 = por %p115_p5, %p114_p4 }
   0xe   :  { %p117_p7 = pnand %p116_p6, %p110_p3 }
  0x10   :  { %120 = shalt.err (!%p117_p7)
}
  0x11   :  { %24 = dma.hbm_to_vmem [thread:$0]  %s199_s0, 256, %s22_s13, [#allocation5]  }
  0x12   :  { %s121_s28 = scalar_lea.hbm %s200_s1, 256 }
  0x13   :  { %p122_p8 = scmp.ne.s32.totalorder %s200_s1, %s121_s28  ;;  %p125_p9 = scmp.lt.u32.totalorder %s121_s28, %s200_s1 }
  0x15   :  { %p127_p10 = pnand %p125_p9, %p122_p8 }
  0x17   :  { %130 = shalt.err (!%p127_p10)
}
  0x18   :  { %s131_s6 = scalar_lea.vmem %s36_s15, 256  ;;  %p136_p12 = scmp.lt.s32.totalorder %s36_s15, %s36_s15 }
  0x19   :  { %p132_p11 = scmp.ne.s32.totalorder %s36_s15, %s131_s6  ;;  %p137_p13 = scmp.lt.s32.totalorder %s131_s6, %s131_s6 }
  0x1b   :  { %p138_p0 = por %p137_p13, %p136_p12 }
  0x1d   :  { %p139_p1 = pnand %p138_p0, %p132_p11 }
  0x1f   :  { %142 = shalt.err (!%p139_p1)
}
  0x20   :  { %38 = dma.hbm_to_vmem [thread:$0]  %s200_s1, 256, %s36_s15, [#allocation7]  }
  0x21   :  { %143 = dma.done.wait [#allocation5], 256  }
  0x22   :  { %144 = vsyncadd [#allocation5], 4294967040 }
  0x23   :  { %145 = dma.done.wait [#allocation7], 256  }
  0x24   :  { %146 = vsyncadd [#allocation7], 4294967040  ;;  %v55_v0 = vld [vmem:[#allocation4] sm:$0xff]  ;;  %v56_v1 = vld [vmem:[#allocation6] sm:$0xff]  ;;  %vm81_vm0 = vcmask 7168  }
  0x25   :  { %v61_v2 = vld [vmem:[#allocation4 + $0x8] sm:$0xff]  ;;  %v57_v3 = vmul.f32 %v56_v1, %v55_v0  ;;  %v62_v4 = vld [vmem:[#allocation6 + $0x8] sm:$0xff]  ;;  %v58_v6 = vadd.f32 %v56_v1, %v55_v0 }
  0x26   :  { %v63_v5 = vmul.f32 %v62_v4, %v61_v2  ;;  %v64_v7 = vadd.f32 %v62_v4, %v61_v2 }
  0x28   :  { %v67_v8 = vadd.f32 %v63_v5, %v57_v3  ;;  %v68_v9 = vadd.f32 %v64_v7, %v58_v6 }
  0x2a   :  { %79 = vadd.xlane.f32.xlu0 %v67_v8 }
  0x2e   :  { %84 = vadd.xlane.f32.xlu0 %v68_v9 }
  0xb7   :  { %v80_v10 = vpop.xlane.xlu0 %79 }
  0xb8   :  { %82 = vst.msk [vmem:[%s201_s2] sm:$0xff] %vm81_vm0, %v80_v10 }
  0xbb   :  { %v85_v11 = vpop.xlane.xlu0 %84 }
  0xbc   :  { %86 = vst.msk [vmem:[%s202_s3] sm:$0xff] %vm81_vm0, %v85_v11 }
  0xbd   :  { %95 = vsyncpa [#allocation5], 1 }
  0xbe   :  { %96 = vsyncpa [#allocation7], 1 }

</bundles_post_ra>
